<compile_context>
chip_gen: v7x
topology: tpu7x:2x2x1
jax: 0.10.0
libtpu: 0.0.40
codegen_flags: <defaults>
</compile_context>

<pallas_src>
import functools

import jax
import jax.numpy as jnp
from jax.experimental import pallas as pl
from jax.experimental.pallas import tpu as pltpu


def _vq_kernel(x_ref, e_ref, e2h_ref, q_ref, idx_ref, sse_ref):
    """Per-tile nearest-codebook search, lane-dense layout.

    x_ref:   (D, TN)  input tile (columns = H*W positions of one batch element)
    e_ref:   (K, D)   codebook
    e2h_ref: (K, 1)   0.5 * ||e_k||^2  (precomputed in the wrapper)
    q_ref:   (D, TN)  quantized outputs
    idx_ref: (1, TN)  int32 code indices
    sse_ref: (1, TN)  per-column sum_c (q - x)^2 (for the MSE loss)
    """
    x = x_ref[...].astype(jnp.float32)        # (D, TN)
    e = e_ref[...].astype(jnp.float32)        # (K, D)
    e2h = e2h_ref[...]                        # (K, 1) f32

    # argmin_k ||x - e_k||^2  ==  argmax_k (e_k . x - 0.5 ||e_k||^2)
    scores = jnp.dot(e, x, preferred_element_type=jnp.float32)   # (K, TN) MXU
    adj = scores - e2h                                           # one VPU pass

    # First-occurrence arg-best over the code axis (matches torch.argmin):
    # min-index among the columns attaining the max adjusted score.
    num_codes = adj.shape[0]
    best = jnp.max(adj, axis=0, keepdims=True)                        # (1, TN)
    krange = jax.lax.broadcasted_iota(jnp.int32, adj.shape, 0)        # (K, TN)
    idx = jnp.min(jnp.where(adj >= best, krange, num_codes),
                  axis=0, keepdims=True)                              # (1, TN)

    onehot = (krange == idx).astype(jnp.float32)                      # (K, TN)

    # quantized = E^T @ onehot -> (D, TN); single codebook copy, transposed-LHS
    # contraction on the MXU.
    q = jax.lax.dot_general(
        e, onehot,
        dimension_numbers=(((0,), (0,)), ((), ())),
        preferred_element_type=jnp.float32)                           # (D, TN)

    q_ref[...] = q.astype(q_ref.dtype)
    idx_ref[...] = idx.astype(jnp.int32)
    d = q - x
    sse_ref[...] = jnp.sum(d * d, axis=0, keepdims=True)


def _is_dual_core_chip():
    """Best-effort detection of dual-TensorCore chips (v7x)."""
    try:
        kind = jax.devices()[0].device_kind.lower()
    except Exception:  # pragma: no cover - defensive
        return False
    return ("v7" in kind) or ("7x" in kind)


def _choose_tile_hw(hw, batch, num_codes):
    """Pick a lane-dense tile width that divides H*W exactly (no padding)."""
    LANE = 128
    if hw % LANE != 0:
        # TODO(synk): a very large H*W that is not a multiple of 128 falls back
        # to one full-row block per batch element (in-kernel masking of a
        # ragged tile would be needed to split it further).
        return hw
    # Cap the tile so the (K, tile) f32 intermediates stay a few MiB.
    max_tile = min(8192, max(LANE, ((4 * 1024 * 1024) // (4 * num_codes)) // LANE * LANE))
    units = hw // LANE
    best = 1
    d = min(units, max_tile // LANE)
    while d >= 1:
        if units % d == 0:
            best = d
            break
        d -= 1
    tile = LANE * best
    # v7x shards "parallel" grid axes across two TensorCores: keep at least two
    # grid steps per core when possible so each core's DMA is double-buffered.
    if _is_dual_core_chip():
        while batch * (hw // tile) < 4 and tile % (2 * LANE) == 0:
            tile //= 2
    return tile


def _vq_pallas(x3, emb, e2h, *, tile_hw):
    """Runs the VQ kernel over x viewed as (B, D, H*W), grid = (B, HW tiles)."""
    B, D, HW = x3.shape
    K, _ = emb.shape
    assert HW % tile_hw == 0
    n_hw = HW // tile_hw
    grid = (B, n_hw)

    out_shapes = (
        jax.ShapeDtypeStruct((B, D, HW), jnp.float32),   # quantized, NCHW order
        jax.ShapeDtypeStruct((B, 1, HW), jnp.int32),     # code indices
        jax.ShapeDtypeStruct((B, 1, HW), jnp.float32),   # per-column SSE
    )

    n_elems = B * HW
    cost = pl.CostEstimate(
        flops=4 * K * D * n_elems,                         # two matmuls
        transcendentals=0,
        bytes_accessed=(2 * D + 2) * n_elems * 4 + (K * D + K) * 4,
    )

    q, idx, sse = pl.pallas_call(
        _vq_kernel,
        out_shape=out_shapes,
        grid_spec=pltpu.PrefetchScalarGridSpec(
            num_scalar_prefetch=0,
            grid=grid,
            in_specs=[
                # Input read directly in NCHW layout: (batch squeezed, D, tile).
                pl.BlockSpec((pl.Squeezed(), D, tile_hw), lambda b, i: (b, 0, i)),
                # Codebook and half-norms: constant index map, stays resident.
                pl.BlockSpec((K, D), lambda b, i: (0, 0)),
                pl.BlockSpec((K, 1), lambda b, i: (0, 0)),
            ],
            out_specs=[
                pl.BlockSpec((pl.Squeezed(), D, tile_hw), lambda b, i: (b, 0, i)),
                pl.BlockSpec((pl.Squeezed(), 1, tile_hw), lambda b, i: (b, 0, i)),
                pl.BlockSpec((pl.Squeezed(), 1, tile_hw), lambda b, i: (b, 0, i)),
            ],
        ),
        compiler_params=pltpu.CompilerParams(
            dimension_semantics=("parallel", "parallel")),
        cost_estimate=cost,
    )(x3, emb, e2h)
    return q, idx, sse


@functools.partial(jax.jit, static_argnames=("commitment_cost",))
def vector_quantizer_forward(x_nchw, embedding, commitment_cost=0.25):
    """Forward pass of the PyTorch VectorQuantizer.

    x_nchw:    (B, C, H, W) with C == embedding_dim
    embedding: (num_embeddings, embedding_dim)
    Returns (loss, quantized_nchw, perplexity, encodings) like the torch module.
    """
    B, C, H, W = x_nchw.shape
    K, D = embedding.shape
    assert C == D
    HW = H * W
    N = B * HW

    # NCHW viewed as (B, C, H*W): free reshape, no transpose / pad / copy.
    x3 = x_nchw.reshape(B, C, HW)

    emb = embedding.astype(jnp.float32)
    e2h = 0.5 * jnp.sum(emb * emb, axis=1, keepdims=True)   # (K, 1), hoisted

    tile_hw = _choose_tile_hw(HW, B, K)
    q3, idx3, sse_cols = _vq_pallas(x3, emb, e2h, tile_hw=tile_hw)

    # Quantized output is already in NCHW order.
    # TODO(synk): no custom VJP — gradients will not reproduce the PyTorch
    # detach()/straight-through semantics; forward values are identical
    # (x + stop_gradient(q - x) == q in the forward pass).
    quantized_nchw = q3.reshape(B, C, H, W).astype(x_nchw.dtype)

    # MSE losses (forward values of q_latent_loss and e_latent_loss coincide;
    # detach() only affects gradients).  SSE was reduced in-kernel.
    mse = jnp.sum(sse_cols) / (N * D)
    loss = mse + commitment_cost * mse

    # encodings in NHWC row order (b, h, w): idx3 is (B, 1, H*W), so the flat
    # reshape already matches the torch flattening order.
    idx = idx3.reshape(N)
    encodings = jax.nn.one_hot(idx, K, dtype=jnp.float32)
    avg_probs = jnp.mean(encodings, axis=0)          # fused with one_hot by XLA
    perplexity = jnp.exp(-jnp.sum(avg_probs * jnp.log(avg_probs + 1e-10)))

    return loss, quantized_nchw, perplexity, encodings


if __name__ == "__main__":
    # Module hyperparameters (small, consistent with the forward pass)
    num_embeddings = 32      # K
    embedding_dim = 8        # D == channel dim of the input
    commitment_cost = 0.25

    # Deterministic parameter init: uniform(-1/K, 1/K), like the torch module.
    key = jax.random.PRNGKey(0)
    k_emb, k_x = jax.random.split(key)
    embedding = jax.random.uniform(
        k_emb, (num_embeddings, embedding_dim), dtype=jnp.float32,
        minval=-1.0 / num_embeddings, maxval=1.0 / num_embeddings)

    # Example input: NCHW, B=2, C=embedding_dim=8, H=W=16 -> N = 512 rows
    x = jax.random.normal(k_x, (2, embedding_dim, 16, 16), dtype=jnp.float32)

    loss, quantized, perplexity, encodings = vector_quantizer_forward(
        x, embedding, commitment_cost=commitment_cost)
    jax.block_until_ready((loss, quantized, perplexity, encodings))

    # Pure-JAX reference check of the Pallas hot path (same math as PyTorch).
    inputs_nhwc = jnp.transpose(x, (0, 2, 3, 1))
    flat = inputs_nhwc.reshape(-1, embedding_dim)
    dist = (jnp.sum(flat**2, axis=1, keepdims=True)
            + jnp.sum(embedding**2, axis=1)
            - 2.0 * flat @ embedding.T)
    idx_ref = jnp.argmin(dist, axis=1)
    enc_ref = jax.nn.one_hot(idx_ref, num_embeddings, dtype=jnp.float32)
    q_ref = (enc_ref @ embedding).reshape(inputs_nhwc.shape)
    mse_ref = jnp.mean((q_ref - inputs_nhwc) ** 2)
    loss_ref = mse_ref * (1.0 + commitment_cost)
    probs_ref = jnp.mean(enc_ref, axis=0)
    perp_ref = jnp.exp(-jnp.sum(probs_ref * jnp.log(probs_ref + 1e-10)))

    assert jnp.allclose(encodings, enc_ref)
    assert jnp.allclose(jnp.transpose(quantized, (0, 2, 3, 1)), q_ref, atol=1e-6)
    assert jnp.allclose(loss, loss_ref, atol=1e-5)
    assert jnp.allclose(perplexity, perp_ref, atol=1e-5)

    print("KERNEL_OK")
</pallas_src>

<mosaic_0001>
module attributes {stable_mosaic.version = 11 : i64} {
  func.func @_vq_kernel(%arg0: i32, %arg1: i32, %arg2: memref<1x8x256xf32, #tpu.memory_space<vmem>>, %arg3: memref<32x8xf32, #tpu.memory_space<vmem>>, %arg4: memref<32x1xf32, #tpu.memory_space<vmem>>, %arg5: memref<1x8x256xf32, #tpu.memory_space<vmem>>, %arg6: memref<1x1x256xi32, #tpu.memory_space<vmem>>, %arg7: memref<1x1x256xf32, #tpu.memory_space<vmem>>) attributes {dimension_semantics = [#tpu.dimension_semantics<parallel>, #tpu.dimension_semantics<parallel>], iteration_bounds = array<i64: 2, 1>, scalar_prefetch = 0 : i64, scratch_operands = 0 : i64, tpu.core_type = #tpu.core_type<tc>, window_params = [{transform_indices = @transform_0, window_bounds = array<i64: 1, 8, 256>}, {pipeline_mode = #tpu.pipeline_mode<synchronous>, transform_indices = @transform_1, window_bounds = array<i64: 32, 8>}, {pipeline_mode = #tpu.pipeline_mode<synchronous>, transform_indices = @transform_2, window_bounds = array<i64: 32, 1>}, {transform_indices = @transform_3, window_bounds = array<i64: 1, 8, 256>}, {transform_indices = @transform_4, window_bounds = array<i64: 1, 1, 256>}, {transform_indices = @transform_5, window_bounds = array<i64: 1, 1, 256>}]} {
    %c0 = arith.constant 0 : index
    %c0_0 = arith.constant 0 : index
    %c0_1 = arith.constant 0 : index
    %0 = vector.load %arg2[%c0, %c0_0, %c0_1] : memref<1x8x256xf32, #tpu.memory_space<vmem>>, vector<1x8x256xf32>
    %1 = vector.shape_cast %0 : vector<1x8x256xf32> to vector<8x256xf32>
    %c0_2 = arith.constant 0 : index
    %c0_3 = arith.constant 0 : index
    %2 = vector.load %arg3[%c0_2, %c0_3] : memref<32x8xf32, #tpu.memory_space<vmem>>, vector<32x8xf32>
    %c0_4 = arith.constant 0 : index
    %c0_5 = arith.constant 0 : index
    %3 = vector.load %arg4[%c0_4, %c0_5] : memref<32x1xf32, #tpu.memory_space<vmem>>, vector<32x1xf32>
    %cst = arith.constant dense<0.000000e+00> : vector<32x256xf32>
    %4 = tpu.matmul %2, %1, %cst {dimension_numbers = #tpu.dot_dimension_numbers<[1], [0], [0], [1], [0, 0, 1, 1], [], []>} : vector<32x8xf32>, vector<8x256xf32>, vector<32x256xf32> -> vector<32x256xf32>
    %5 = vector.broadcast %3 : vector<32x1xf32> to vector<32x256xf32>
    %6 = arith.subf %4, %5 : vector<32x256xf32>
    %cst_6 = arith.constant dense<0xFF800000> : vector<256xf32>
    %7 = vector.multi_reduction <maximumf>, %6, %cst_6 [0] : vector<32x256xf32> to vector<256xf32>
    %8 = vector.shape_cast %7 : vector<256xf32> to vector<1x256xf32>
    %9 = tpu.iota {dimensions = array<i32: 0>} : vector<32x256xi32>
    %10 = vector.broadcast %8 : vector<1x256xf32> to vector<32x256xf32>
    %11 = arith.cmpf oge, %6, %10 : vector<32x256xf32>
    %c32_i32 = arith.constant 32 : i32
    %12 = vector.broadcast %c32_i32 : i32 to vector<32x256xi32>
    %13 = arith.select %11, %9, %12 : vector<32x256xi1>, vector<32x256xi32>
    %cst_7 = arith.constant dense<2147483647> : vector<256xi32>
    %14 = vector.multi_reduction <minsi>, %13, %cst_7 [0] : vector<32x256xi32> to vector<256xi32>
    %15 = vector.shape_cast %14 : vector<256xi32> to vector<1x256xi32>
    %16 = vector.broadcast %15 : vector<1x256xi32> to vector<32x256xi32>
    %17 = arith.cmpi eq, %9, %16 : vector<32x256xi32>
    %18 = arith.extui %17 : vector<32x256xi1> to vector<32x256xi32>
    %19 = arith.sitofp %18 : vector<32x256xi32> to vector<32x256xf32>
    %cst_8 = arith.constant dense<0.000000e+00> : vector<8x256xf32>
    %20 = tpu.matmul %2, %19, %cst_8 {dimension_numbers = #tpu.dot_dimension_numbers<[0], [0], [1], [1], [0, 1, 1, 1], [], []>} : vector<32x8xf32>, vector<32x256xf32>, vector<8x256xf32> -> vector<8x256xf32>
    %c0_9 = arith.constant 0 : index
    %c0_10 = arith.constant 0 : index
    %c0_11 = arith.constant 0 : index
    %21 = vector.load %arg5[%c0_9, %c0_10, %c0_11] : memref<1x8x256xf32, #tpu.memory_space<vmem>>, vector<1x8x256xf32>
    %22 = vector.shape_cast %21 : vector<1x8x256xf32> to vector<8x256xf32>
    %23 = vector.shape_cast %20 : vector<8x256xf32> to vector<1x8x256xf32>
    tpu.vector_store %arg5[%c0_9, %c0_10, %c0_11], %23 {strides = array<i32>} : memref<1x8x256xf32, #tpu.memory_space<vmem>>, vector<1x8x256xf32>,
    %c0_12 = arith.constant 0 : index
    %c0_13 = arith.constant 0 : index
    %c0_14 = arith.constant 0 : index
    %24 = vector.load %arg6[%c0_12, %c0_13, %c0_14] : memref<1x1x256xi32, #tpu.memory_space<vmem>>, vector<1x1x256xi32>
    %25 = vector.shape_cast %24 : vector<1x1x256xi32> to vector<1x256xi32>
    %26 = vector.shape_cast %15 : vector<1x256xi32> to vector<1x1x256xi32>
    tpu.vector_store %arg6[%c0_12, %c0_13, %c0_14], %26 {strides = array<i32>} : memref<1x1x256xi32, #tpu.memory_space<vmem>>, vector<1x1x256xi32>,
    %27 = arith.subf %20, %1 : vector<8x256xf32>
    %28 = arith.mulf %27, %27 : vector<8x256xf32>
    %cst_15 = arith.constant dense<0.000000e+00> : vector<256xf32>
    %29 = vector.multi_reduction <add>, %28, %cst_15 [0] : vector<8x256xf32> to vector<256xf32>
    %30 = vector.shape_cast %29 : vector<256xf32> to vector<1x256xf32>
    %c0_16 = arith.constant 0 : index
    %c0_17 = arith.constant 0 : index
    %c0_18 = arith.constant 0 : index
    %31 = vector.load %arg7[%c0_16, %c0_17, %c0_18] : memref<1x1x256xf32, #tpu.memory_space<vmem>>, vector<1x1x256xf32>
    %32 = vector.shape_cast %31 : vector<1x1x256xf32> to vector<1x256xf32>
    %33 = vector.shape_cast %30 : vector<1x256xf32> to vector<1x1x256xf32>
    tpu.vector_store %arg7[%c0_16, %c0_17, %c0_18], %33 {strides = array<i32>} : memref<1x1x256xf32, #tpu.memory_space<vmem>>, vector<1x1x256xf32>,
    return
  }
  func.func @transform_0(%arg0: i32, %arg1: i32) -> (i32, i32, i32) {
    %c0_i32 = arith.constant 0 : i32
    %c0_i32_0 = arith.constant 0 : i32
    return %arg0, %c0_i32, %arg1 : i32, i32, i32
  }
  func.func @transform_1(%arg0: i32, %arg1: i32) -> (i32, i32) {
    %c0_i32 = arith.constant 0 : i32
    %c0_i32_0 = arith.constant 0 : i32
    %c0_i32_1 = arith.constant 0 : i32
    return %c0_i32, %c0_i32_0 : i32, i32
  }
  func.func @transform_2(%arg0: i32, %arg1: i32) -> (i32, i32) {
    %c0_i32 = arith.constant 0 : i32
    %c0_i32_0 = arith.constant 0 : i32
    %c0_i32_1 = arith.constant 0 : i32
    return %c0_i32, %c0_i32_0 : i32, i32
  }
  func.func @transform_3(%arg0: i32, %arg1: i32) -> (i32, i32, i32) {
    %c0_i32 = arith.constant 0 : i32
    %c0_i32_0 = arith.constant 0 : i32
    return %arg0, %c0_i32, %arg1 : i32, i32, i32
  }
  func.func @transform_4(%arg0: i32, %arg1: i32) -> (i32, i32, i32) {
    %c0_i32 = arith.constant 0 : i32
    %c0_i32_0 = arith.constant 0 : i32
    return %arg0, %c0_i32, %arg1 : i32, i32, i32
  }
  func.func @transform_5(%arg0: i32, %arg1: i32) -> (i32, i32, i32) {
    %c0_i32 = arith.constant 0 : i32
    %c0_i32_0 = arith.constant 0 : i32
    return %arg0, %c0_i32, %arg1 : i32, i32, i32
  }
}

</mosaic_0001>

<bundles_post_ra>
// kernel: vector_quantizer_forward.1
= control target key start
LH: loop header
LB: loop body
LE: loop exit
PB: predicated region body
PF: predicated region fallthrough
CT: control target
= control target key end

     0   :  { %s1011_s18 = smov 0   ;;  %s1013_s19 = smov 0   ;;  %s1132_s0 = inlined_call_operand.vmem [shape: f32[2,8,256], index: 0, kind: input, shape index: {}]   ;;  %s1133_s1 = inlined_call_operand.vmem [shape: f32[32,8], index: 1, kind: input, shape index: {}]   ;;  %s1134_s2 = inlined_call_operand.vmem [shape: f32[32,1], index: 2, kind: input, shape index: {}]   ;;  %s1135_s3 = inlined_call_operand.vmem [shape: f32[2,8,256], index: 3, kind: output, shape index: {0}]   ;;  %s1136_s4 = inlined_call_operand.vmem [shape: s32[2,1,256], index: 4, kind: output, shape index: {1}]   ;;  %s1137_s5 = inlined_call_operand.vmem [shape: f32[2,1,256], index: 5, kind: output, shape index: {2}]  }
   0x1   :  { %s1015_s20 = smov 0  }
   0x2 LB: > { %s28_s21 = sadd.s32 1, %s971_s19  ;;  %p883_p0 = scmp.ge.s32.totalorder %s975_s20, 1  ;;  %s975_s20 = sphi %s1015_s20, %s16_s20   ;;  %s971_s19 = sphi %s1013_s19, %s1141_s19   ;;  %s967_s18 = sphi %s1011_s18, %s1140_s18  }
   0x3   : > { %p30_p1 = scmp.ge.s32.totalorder %s28_s21, 2  ;;  %p217_p2 = scmp.lt.s32.totalorder %s975_s20, 3 }
   0x5   : > { %s1143_s21 = smov (%p30_p1, %s28_s21), 0  ;;  %p218_p3 = pnand %p883_p0, %p217_p2 }
   0x6   : > { %p270_p4 = scmp.lt.s32.totalorder (!%p218_p3), %s967_s18, 1  ;;  %v977_v0 = vmov (!%p218_p3), 0.0   ;;  %v313_v1 = vld [vmem:[%s1134_s2] sm:$0xff] (!%p218_p3)  ;;  %v978_v2 = vmov (!%p218_p3), 0   ;;  %v315_v3 = vld [vmem:[%s1134_s2 + $0x10] sm:$0xff] (!%p218_p3)  ;;  %v314_v4 = vld [vmem:[%s1134_s2 + $0x8] sm:$0xff] (!%p218_p3)  ;;  %v465_v39 = vlaneseq (!%p218_p3) }
   0x7   : > { %221 = sbr.rel (%p218_p3) target bundleno = 530 (0x212), region = 32  ;;  %394 = vmatprep.mubr.f32.mxu0 (!%p218_p3), %v977_v0  ;;  %640 = vmatprep.mubr.f32.mxu1 (!%p218_p3), %v977_v0  ;;  %v316_v5 = vld [vmem:[%s1134_s2 + $0x18] sm:$0xff] (!%p218_p3)  ;;  %v309_v8 = vld [vmem:[%s1133_s1] sm:$0xff] (!%p218_p3)  ;;  %vm317_vm0 = vcmask (!%p218_p3), 64512   ;;  %v310_v9 = vld [vmem:[%s1133_s1 + $0x8] sm:$0xff] (!%p218_p3) }
   0x8   : > { %951 = vset.pattern.permute.xlu0 (!%p218_p3), %v978_v2  ;;  %952 = vset.pattern.permute.xlu1 (!%p218_p3), %v978_v2  ;;  %v311_v10 = vld [vmem:[%s1133_s1 + $0x10] sm:$0xff] (!%p218_p3)  ;;  %v312_v11 = vld [vmem:[%s1133_s1 + $0x18] sm:$0xff] (!%p218_p3)  ;;  %v1068_v44 = vshrl.u32 (!%p218_p3), %v465_v39, 7 }
   0x9   : > { %421 = vperm.xlu0 (!%p218_p3), %951, %v313_v1   ;;  %431 = vperm.xlu1 (!%p218_p3), %952, %v315_v3  }
   0xa   : > { %v1071_v49 = vadd.s32 (!%p218_p3), 8, %v1068_v44  ;;  %v1074_v50 = vadd.s32 (!%p218_p3), 16, %v1068_v44  ;;  %v1077_v51 = vadd.s32 (!%p218_p3), 24, %v1068_v44 }
   0xd   : > { %426 = vperm.xlu0 (!%p218_p3), %951, %v314_v4   ;;  %436 = vperm.xlu1 (!%p218_p3), %952, %v316_v5  }
   0xe   : > { %s1145_s18 = smov (!%p270_p4, %s967_s18), 1 }
   0xf   : > { %s913_s26 = sshll.u32 %s1145_s18, 4  ;;  %s888_s17 = sshll.u32 %s1145_s18, 1 }
  0x10   : > { %s277_s6 = scalar_lea.vmem %s1132_s0, %s913_s26  ;;  %s296_s24 = scalar_lea.vmem %s1136_s4, %s888_s17 }
  0x11   : > { %v1049_v6 = vld [vmem:[%s277_s6 + $0x8] sm:$0xff]  ;;  %v1051_v7 = vld [vmem:[%s277_s6] sm:$0xff]  ;;  %s287_s28 = scalar_lea.vmem %s1135_s3, %s913_s26  ;;  %s305_s30 = scalar_lea.vmem %s1137_s5, %s888_s17 }
  0x12   : > { %330 = vmatprep.subr.mxu0 %v1049_v6 }
  0x13   : > { %331 = vmatpush1.msra.mxu0 %v1051_v7 }
  0x14   : > { %890 = vmatmul.mubr.msk.f32.vlgmr.msra.gmra.mrb[0].mxu0 %vm317_vm0, %v309_v8 }
  0x15   : > { %400 = vmatprep.mubr.f32.mxu0 %v977_v0 }
  0x18   : > { %891 = vmatmul.mubr.msk.f32.gmra.mrb[2].mxu0 %vm317_vm0, %v310_v9 }
  0x19   : > { %406 = vmatprep.mubr.f32.mxu0 %v977_v0 }
  0x1c   : > { %892 = vmatmul.mubr.msk.f32.gmra.mrb[4].mxu0 %vm317_vm0, %v311_v10 }
  0x1d   : > { %412 = vmatprep.mubr.f32.mxu0 %v977_v0 }
  0x20   : > { %893 = vmatmul.mubr.msk.f32.gmra.mrb[6].mxu0 %vm317_vm0, %v312_v11 }
  0x2b   : > { %540 = vxpose.xlu0.b32.start [1/4] (short) (narrow) %v309_v8, 8 }
  0x2f   : > { %541 = vxpose.xlu0.b32.cont [2/4] (short) (narrow) %v310_v9, 8 }
  0x33   : > { %542 = vxpose.xlu0.b32.cont [3/4] (short) (narrow) %v311_v10, 8 }
  0x37   : > { %543 = vxpose.xlu0.b32.end [4/4] (short) (narrow) %v312_v11, 8  ;;  %v979_v11 = vmov 1966171168  }
  0x88   : > { %v422_v14 = vpop.permute.xlu0 %421  ;;  %v432_v17 = vpop.permute.xlu1 %431 }
  0x8c   : > { %v427_v23 = vpop.permute.xlu0 %426  ;;  %v437_v26 = vpop.permute.xlu1 %436 }
  0xe7   : > { %v396_v12 = vpop.f32.mrb[0].mxu0 }
  0xe8   : > { %v398_v13 = vpop.f32.mrb[1].mxu0  ;;  %v439_v19 = vsub.f32 %v396_v12, %v422_v14  ;;  %v651_v12 = vunpack.c.l.s4 %v979_v11 }
  0xe9   : > { %v440_v22 = vsub.f32 %v398_v13, %v422_v14 }
  0xeb   : > { %v402_v15 = vpop.f32.mrb[2].mxu0 }
  0xec   : > { %v404_v16 = vpop.f32.mrb[3].mxu0  ;;  %v441_v29 = vsub.f32 %v402_v15, %v427_v23 }
  0xed   : > { %v442_v32 = vsub.f32 %v404_v16, %v427_v23 }
  0xef   : > { %v408_v18 = vpop.f32.mrb[4].mxu0 }
  0xf0   : > { %v443_v20 = vsub.f32 %v408_v18, %v432_v17  ;;  %v410_v21 = vpop.f32.mrb[5].mxu0 }
  0xf1   : > { %v444_v24 = vsub.f32 %v410_v21, %v432_v17  ;;  %v652_v17 = vunpack.c.0.s8 %v651_v12 }
  0xf2   : > { %v447_v25 = vmax.f32 %v439_v19, %v443_v20 }
  0xf3   : > { %v456_v27 = vmax.f32 %v440_v22, %v444_v24  ;;  %v414_v28 = vpop.f32.mrb[6].mxu0  ;;  %v655_v21 = vsub.s32 %v652_v17, %v1068_v44 }
  0xf4   : > { %v445_v30 = vsub.f32 %v414_v28, %v437_v26  ;;  %v416_v31 = vpop.f32.mrb[7].mxu0  ;;  %v556_v28 = vpop.trf.xlu0 }
  0xf5   : > { %v446_v33 = vsub.f32 %v416_v31, %v437_v26 }
  0xf6   : > { %v448_v34 = vmax.f32 %v441_v29, %v445_v30 }
  0xf7   : > { %v457_v35 = vmax.f32 %v442_v32, %v446_v33 }
  0xf8   : > { %v449_v36 = vmax.f32 %v447_v25, %v448_v34 }
  0xf9   : > { %v458_v37 = vmax.f32 %v456_v27, %v457_v35 }
  0xfa   : > { %v450_v38 = vrot.slane %v449_v36, 4 }
  0xfb   : > { %v459_v40 = vrot.slane %v458_v37, 4 }
  0xfc   : > { %v451_v41 = vmax.f32 %v449_v36, %v450_v38 }
  0xfd   : > { %v460_v42 = vmax.f32 %v458_v37, %v459_v40 }
  0xfe   : > { %v452_v43 = vrot.slane %v451_v41, 2 }
  0xff   : > { %v461_v45 = vrot.slane %v460_v42, 2 }
 0x100   : > { %v453_v46 = vmax.f32 %v451_v41, %v452_v43 }
 0x101   : > { %v462_v47 = vmax.f32 %v460_v42, %v461_v45 }
 0x102   : > { %v454_v48 = vrot.slane %v453_v46, 1 }
 0x103   : > { %v463_v52 = vrot.slane %v462_v47, 1 }
 0x104   : > { %v455_v53 = vmax.f32 %v453_v46, %v454_v48 }
 0x105   : > { %v464_v54 = vmax.f32 %v462_v47, %v463_v52 }
 0x106   : > { %vm470_vm1 = vcmp.ge.f32.partialorder %v439_v19, %v455_v53  ;;  %vm472_vm2 = vcmp.ge.f32.partialorder %v441_v29, %v455_v53  ;;  %vm474_vm3 = vcmp.ge.f32.partialorder %v443_v20, %v455_v53  ;;  %vm476_vm4 = vcmp.ge.f32.partialorder %v445_v30, %v455_v53 }
 0x107   : > { %v478_v55 = vsel %vm470_vm1, %v1068_v44, 32  ;;  %v480_v56 = vsel %vm472_vm2, %v1071_v49, 32  ;;  %v482_v57 = vsel %vm474_vm3, %v1074_v50, 32  ;;  %v484_v58 = vsel %vm476_vm4, %v1077_v51, 32 }
 0x108   : > { %vm486_vm5 = vcmp.lt.s32.totalorder %v478_v55, %v482_v57  ;;  %vm488_vm6 = vcmp.lt.s32.totalorder %v480_v56, %v484_v58  ;;  %vm471_vm7 = vcmp.ge.f32.partialorder %v440_v22, %v464_v54  ;;  %vm473_vm8 = vcmp.ge.f32.partialorder %v442_v32, %v464_v54 }
 0x109   : > { %v487_v59 = vsel %vm486_vm5, %v478_v55, %v482_v57  ;;  %v489_v60 = vsel %vm488_vm6, %v480_v56, %v484_v58  ;;  %vm475_vm9 = vcmp.ge.f32.partialorder %v444_v24, %v464_v54  ;;  %vm477_vm10 = vcmp.ge.f32.partialorder %v446_v33, %v464_v54 }
 0x10a   : > { %vm490_vm11 = vcmp.lt.s32.totalorder %v487_v59, %v489_v60  ;;  %v479_v61 = vsel %vm471_vm7, %v1068_v44, 32  ;;  %v481_v62 = vsel %vm473_vm8, %v1071_v49, 32  ;;  %v483_v63 = vsel %vm475_vm9, %v1074_v50, 32 }
 0x10b   : > { %v491_v0 = vsel %vm490_vm11, %v487_v59, %v489_v60  ;;  %v485_v1 = vsel %vm477_vm10, %v1077_v51, 32  ;;  %vm501_vm12 = vcmp.lt.s32.totalorder %v479_v61, %v483_v63  ;;  %v980_v24 = vmov 1.0|1.0  }
 0x10c   : > { %v492_v2 = vrot.slane %v491_v0, 4  ;;  %v502_v3 = vsel %vm501_vm12, %v479_v61, %v483_v63  ;;  %vm503_vm13 = vcmp.lt.s32.totalorder %v481_v62, %v485_v1 }
 0x10d   : > { %v504_v4 = vsel %vm503_vm13, %v481_v62, %v485_v1 }
 0x10e   : > { %vm493_vm14 = vcmp.lt.s32.totalorder %v491_v0, %v492_v2  ;;  %vm505_vm15 = vcmp.lt.s32.totalorder %v502_v3, %v504_v4 }
 0x10f   : > { %v494_v5 = vsel %vm493_vm14, %v491_v0, %v492_v2  ;;  %v506_v8 = vsel %vm505_vm15, %v502_v3, %v504_v4 }
 0x110   : > { %v495_v9 = vrot.slane %v494_v5, 2  ;;  %v507_v10 = vrot.slane %v506_v8, 4 }
 0x112   : > { %vm496_vm0 = vcmp.lt.s32.totalorder %v494_v5, %v495_v9  ;;  %vm508_vm1 = vcmp.lt.s32.totalorder %v506_v8, %v507_v10 }
 0x113   : > { %v509_v13 = vsel %vm508_vm1, %v506_v8, %v507_v10  ;;  %v497_v14 = vsel %vm496_vm0, %v494_v5, %v495_v9  ;;  %vm1103_vm0 = vcmp.lt.s32.totalorder %v465_v39, 256 }
 0x114   : > { %v510_v15 = vrot.slane %v509_v13, 2  ;;  %v498_v16 = vrot.slane %v497_v14, 1 }
 0x116   : > { %vm511_vm2 = vcmp.lt.s32.totalorder %v509_v13, %v510_v15  ;;  %vm499_vm3 = vcmp.lt.s32.totalorder %v497_v14, %v498_v16 }
 0x117   : > { %v512_v18 = vsel %vm511_vm2, %v509_v13, %v510_v15  ;;  %v500_v20 = vsel %vm499_vm3, %v497_v14, %v498_v16  ;;  %vm572_vm2 = vcmask 261120  }
 0x118   : > { %v513_v19 = vrot.slane %v512_v18, 1  ;;  %vm516_vm5 = vcmp.eq.s32.totalorder %v1068_v44, %v500_v20  ;;  %vm518_vm6 = vcmp.eq.s32.totalorder %v1071_v49, %v500_v20  ;;  %vm520_vm14 = vcmp.eq.s32.totalorder %v1074_v50, %v500_v20 }
 0x119   : > { %vm917_vm12 = vmpackc.low %vm518_vm6, %vm516_vm5  ;;  %vm522_vm15 = vcmp.eq.s32.totalorder %v1077_v51, %v500_v20 }
 0x11a   : > { %vm514_vm4 = vcmp.lt.s32.totalorder %v512_v18, %v513_v19  ;;  %vm921_vm1 = vmpackc.low %vm522_vm15, %vm520_vm14 }
 0x11b   : > { %v515_v22 = vsel %vm514_vm4, %v512_v18, %v513_v19 }
 0x11c   : > { %vm517_vm7 = vcmp.eq.s32.totalorder %v1068_v44, %v515_v22  ;;  %vm519_vm8 = vcmp.eq.s32.totalorder %v1071_v49, %v515_v22  ;;  %v649_v23 = vcombine.low %v500_v20, %v515_v22  ;;  %vm521_vm9 = vcmp.eq.s32.totalorder %v1074_v50, %v515_v22 }
 0x11d   : > { %vm915_vm10 = vmpackc.low %vm519_vm8, %vm517_vm7  ;;  %vm523_vm11 = vcmp.eq.s32.totalorder %v1077_v51, %v515_v22 }
 0x11e   : > { %916 = vmatprep.subr.msk.bf16.mxu1 %vm915_vm10, %v980_v24  ;;  %v656_v25 = vrot.slane %v649_v23, %v655_v21  ;;  %vm919_vm13 = vmpackc.low %vm523_vm11, %vm521_vm9 }
 0x11f   : > { %918 = vmatpush1.bf16.msk.msra.mxu1 %vm917_vm12, %v980_v24 }
 0x120   : > { %v663_v27 = vrot.slane %v656_v25, %v655_v21  ;;  %920 = vmatprep.subr.msk.bf16.mxu1 %vm919_vm13, %v980_v24 }
 0x122   : > { %668 = vst.msk [vmem:[%s296_s24] sm:$0x3] %vm1103_vm0, %v663_v27 }
 0x123   : > { %922 = vmatpush1.bf16.msk.msra.mxu1 %vm921_vm1, %v980_v24 }
 0x126   : > { %910 = vmatmul.mubr.msk.f32.vlgmr.msra.gmra.mrb[0].mxu1 %vm572_vm2, %v556_v28 }
 0x1f9   : > { %v642_v29 = vpop.f32.mrb[0].mxu1 }
 0x1fa   : > { %v669_v30 = vsub.f32 %v642_v29, %v1051_v7  ;;  %v644_v31 = vpop.f32.mrb[1].mxu1  ;;  %647 = vst [vmem:[%s287_s28] sm:$0xff] %v642_v29 }
 0x1fb   : > { %648 = vst [vmem:[%s287_s28 + $0x8] sm:$0xff] %v644_v31  ;;  %v670_v32 = vsub.f32 %v644_v31, %v1049_v6 }
 0x1fc   : > { %v671_v33 = vmul.f32 %v669_v30, %v669_v30 }
 0x1fd   : > { %v672_v34 = vmul.f32 %v670_v32, %v670_v32 }
 0x1fe   : > { %v673_v35 = vrot.slane %v671_v33, 4 }
 0x1ff   : > { %v679_v36 = vrot.slane %v672_v34, 4 }
 0x200   : > { %v674_v37 = vadd.f32 %v673_v35, %v671_v33 }
 0x201   : > { %v680_v38 = vadd.f32 %v679_v36, %v672_v34 }
 0x202   : > { %v675_v39 = vrot.slane %v674_v37, 2 }
 0x203   : > { %v681_v40 = vrot.slane %v680_v38, 2 }
 0x204   : > { %v676_v41 = vadd.f32 %v675_v39, %v674_v37 }
 0x205   : > { %v682_v42 = vadd.f32 %v681_v40, %v680_v38 }
 0x206   : > { %v677_v43 = vrot.slane %v676_v41, 1 }
 0x207   : > { %v683_v44 = vrot.slane %v682_v42, 1 }
 0x208   : > { %v678_v45 = vadd.f32 %v677_v43, %v676_v41 }
 0x209   : > { %v684_v7 = vadd.f32 %v683_v44, %v682_v42 }
 0x20b   : > { %v687_v46 = vcombine.low %v678_v45, %v684_v7 }
 0x20d   : > { %v694_v47 = vrot.slane %v687_v46, %v655_v21 }
 0x20f   : > { %v701_v6 = vrot.slane %v694_v47, %v655_v21 }
 0x211   : > { %703 = vst.msk [vmem:[%s305_s30] sm:$0x3] %vm1103_vm0, %v701_v6 }
 0x212 PF: > { %s16_s20 = sadd.s32 1, %s975_s20   ;;  %s1140_s18 = smov %s971_s19 }
 0x213   : > { %p13_p5 = scmp.ge.s32.totalorder %s16_s20, 4   ;;  %s1141_s19 = smov %s1143_s21 }
 0x215   :  { %15 = sbr.rel (!%p13_p5) target bundleno = 2 (0x2), region = 86 }

</bundles_post_ra>
